<compile_context>
chip_gen: v7x
topology: tpu7x:2x2x1
jax: 0.10.0
libtpu: 0.0.40
codegen_flags: <defaults>
</compile_context>

<pallas_src>
import functools

import jax
import jax.numpy as jnp
from jax.experimental import pallas as pl
from jax.experimental.pallas import tpu as pltpu

_LANE = 128


def _ceil_to(x, m):
    return ((x + m - 1) // m) * m


def odefunc_kernel(yt_ref, w1_ref, b1_ref, w2_ref, b2_ref, ot_ref):
    """One batch tile, batch on the lane axis.

    yt_ref: (din, TB)    w1_ref: (Hp, din)   b1_ref: (Hp, 1)
    w2_ref: (dout, Hp)   b2_ref: (dout, 1)   ot_ref: (dout, TB)
    """
    yt = yt_ref[...].astype(jnp.float32)            # (din, TB)
    w1 = w1_ref[...]                                # (Hp, din)

    # --- layer 1: K = din (=2) contraction as VPU broadcast-FMAs (MXU skipped).
    # Start from the bias broadcast so the adds fuse into the FMA chain.
    h = b1_ref[...] + w1[:, 0:1] * yt[0:1, :]       # (Hp, TB)
    for i in range(1, yt_ref.shape[0]):             # din is tiny and static
        h = h + w1[:, i:i + 1] * yt[i:i + 1, :]
    h = jnp.maximum(h, 0.0)                         # ReLU

    # --- layer 2: (dout, Hp) @ (Hp, TB) on the MXU; N = TB (lane-dense output).
    o = jnp.dot(w2_ref[...], h, preferred_element_type=jnp.float32)
    o = o + b2_ref[...]                             # broadcast (dout, 1)
    ot_ref[...] = o.astype(ot_ref.dtype)


def _pick_tile(batch_padded):
    """Lane-multiple batch tile, capped at 1024, preferring >= 2 grid steps."""
    tile = max(_LANE, min(1024, batch_padded))
    if batch_padded > _LANE and batch_padded // tile < 2:
        tile = max(_LANE, _ceil_to(batch_padded // 2, _LANE))
    return tile


@functools.partial(jax.jit, static_argnames=("tile_b",))
def odefunc_forward(t, y, w1, b1, w2, b2, *, tile_b=None):
    """Pallas forward of ODEFunc: relu(y @ W1.T + b1) @ W2.T + b2.

    y: (B, 2); params in PyTorch layout: w1 (50, 2), b1 (50,), w2 (2, 50),
    b2 (2,). `t` is unused (matches ODEFunc.forward signature).
    """
    del t
    B, din = y.shape
    dhid, _ = w1.shape
    dout, _ = w2.shape
    dtype = y.dtype

    # Pad hidden dim to a multiple of 8 (full sublane groups). Zero padding is
    # inert: relu(0) = 0 and the padded W2 columns are zero.
    dhid_p = _ceil_to(dhid, 8)
    w1p = jnp.zeros((dhid_p, din), jnp.float32).at[:dhid, :].set(
        w1.astype(jnp.float32))
    b1p = jnp.zeros((dhid_p, 1), jnp.float32).at[:dhid, 0].set(
        b1.astype(jnp.float32))
    w2p = jnp.zeros((dout, dhid_p), jnp.float32).at[:, :dhid].set(
        w2.astype(jnp.float32))
    b2p = b2.astype(jnp.float32).reshape(dout, 1)

    # Pad batch to a lane multiple and pick a tile (>= 2 grid steps if useful).
    Bp = _ceil_to(B, _LANE)
    if tile_b is None:
        tile_b = _pick_tile(Bp)
    Bp = _ceil_to(Bp, tile_b)
    grid = (Bp // tile_b,)

    # Batch-on-lane layout: (din, Bp) in, (dout, Bp) out.
    yt = jnp.zeros((din, Bp), dtype).at[:, :B].set(y.T)

    ot = pl.pallas_call(
        odefunc_kernel,
        out_shape=jax.ShapeDtypeStruct((dout, Bp), dtype),
        grid_spec=pltpu.PrefetchScalarGridSpec(
            num_scalar_prefetch=0,
            grid=grid,
            in_specs=[
                pl.BlockSpec((din, tile_b), lambda i: (0, i)),    # yT tile
                # Grid-invariant params: constant index maps -> fetched once,
                # stay resident in VMEM across grid steps.
                pl.BlockSpec((dhid_p, din), lambda i: (0, 0)),    # W1 (padded)
                pl.BlockSpec((dhid_p, 1), lambda i: (0, 0)),      # b1
                pl.BlockSpec((dout, dhid_p), lambda i: (0, 0)),   # W2 (padded)
                pl.BlockSpec((dout, 1), lambda i: (0, 0)),        # b2
            ],
            out_specs=pl.BlockSpec((dout, tile_b), lambda i: (0, i)),
        ),
        compiler_params=pltpu.CompilerParams(
            dimension_semantics=("parallel",),  # shard batch tiles over v7x TCs
        ),
    )(yt, w1p, b1p, w2p, b2p)

    return ot[:, :B].T


def init_odefunc_params(key, dtype=jnp.float32):
    # Matches the PyTorch init: weights ~ N(0, 0.1), biases = 0, stored in
    # PyTorch layout (out_features, in_features), so forward is y @ W.T + b.
    k1, k2 = jax.random.split(key)
    w1 = (0.1 * jax.random.normal(k1, (50, 2))).astype(dtype)
    b1 = jnp.zeros((50,), dtype)
    w2 = (0.1 * jax.random.normal(k2, (2, 50))).astype(dtype)
    b2 = jnp.zeros((2,), dtype)
    return w1, b1, w2, b2


if __name__ == "__main__":
    key = jax.random.PRNGKey(0)
    kp, ky1, ky2 = jax.random.split(key, 3)

    w1, b1, w2, b2 = init_odefunc_params(kp)
    t = jnp.float32(0.0)  # unused scalar time (matches ODEFunc.forward)

    def ref_fn(y):
        return jnp.maximum(y @ w1.T + b1, 0.0) @ w2.T + b2

    ok = True

    # (a) batch big enough for 2 lane-dense grid steps (tile_b=128, grid=(2,)).
    y_big = jax.random.normal(ky1, (256, 2), jnp.float32)
    out_big = jax.block_until_ready(odefunc_forward(t, y_big, w1, b1, w2, b2))
    ok &= out_big.shape == (256, 2)
    ok &= bool(jnp.allclose(out_big, ref_fn(y_big), atol=1e-5, rtol=1e-5))

    # (b) tiny batch exercising the zero-padding path (padded to one 128 tile).
    y_small = jax.random.normal(ky2, (8, 2), jnp.float32)
    out_small = jax.block_until_ready(
        odefunc_forward(t, y_small, w1, b1, w2, b2))
    ok &= out_small.shape == (8, 2)
    ok &= bool(jnp.allclose(out_small, ref_fn(y_small), atol=1e-5, rtol=1e-5))

    if ok:
        print("KERNEL_OK")
    else:
        raise SystemExit("mismatch vs reference")
</pallas_src>

<mosaic_0001>
module attributes {stable_mosaic.version = 11 : i64} {
  func.func @odefunc_kernel(%arg0: i32, %arg1: memref<2x128xf32, #tpu.memory_space<vmem>>, %arg2: memref<56x2xf32, #tpu.memory_space<vmem>>, %arg3: memref<56x1xf32, #tpu.memory_space<vmem>>, %arg4: memref<2x56xf32, #tpu.memory_space<vmem>>, %arg5: memref<2x1xf32, #tpu.memory_space<vmem>>, %arg6: memref<2x128xf32, #tpu.memory_space<vmem>>) attributes {dimension_semantics = [#tpu.dimension_semantics<parallel>], iteration_bounds = array<i64: 2>, scalar_prefetch = 0 : i64, scratch_operands = 0 : i64, tpu.core_type = #tpu.core_type<tc>, window_params = [{transform_indices = @transform_0, window_bounds = array<i64: 2, 128>}, {pipeline_mode = #tpu.pipeline_mode<synchronous>, transform_indices = @transform_1, window_bounds = array<i64: 56, 2>}, {pipeline_mode = #tpu.pipeline_mode<synchronous>, transform_indices = @transform_2, window_bounds = array<i64: 56, 1>}, {pipeline_mode = #tpu.pipeline_mode<synchronous>, transform_indices = @transform_3, window_bounds = array<i64: 2, 56>}, {pipeline_mode = #tpu.pipeline_mode<synchronous>, transform_indices = @transform_4, window_bounds = array<i64: 2, 1>}, {transform_indices = @transform_5, window_bounds = array<i64: 2, 128>}]} {
    %c0 = arith.constant 0 : index
    %c0_0 = arith.constant 0 : index
    %0 = vector.load %arg1[%c0, %c0_0] : memref<2x128xf32, #tpu.memory_space<vmem>>, vector<2x128xf32>
    %c0_1 = arith.constant 0 : index
    %c0_2 = arith.constant 0 : index
    %1 = vector.load %arg2[%c0_1, %c0_2] : memref<56x2xf32, #tpu.memory_space<vmem>>, vector<56x2xf32>
    %c0_3 = arith.constant 0 : index
    %c0_4 = arith.constant 0 : index
    %2 = vector.load %arg3[%c0_3, %c0_4] : memref<56x1xf32, #tpu.memory_space<vmem>>, vector<56x1xf32>
    %3 = vector.extract_strided_slice %1 {offsets = [0, 0], sizes = [56, 1], strides = [1, 1]} : vector<56x2xf32> to vector<56x1xf32>
    %4 = vector.extract_strided_slice %0 {offsets = [0, 0], sizes = [1, 128], strides = [1, 1]} : vector<2x128xf32> to vector<1x128xf32>
    %5 = vector.broadcast %3 : vector<56x1xf32> to vector<56x128xf32>
    %6 = vector.broadcast %4 : vector<1x128xf32> to vector<56x128xf32>
    %7 = arith.mulf %5, %6 : vector<56x128xf32>
    %8 = vector.broadcast %2 : vector<56x1xf32> to vector<56x128xf32>
    %9 = arith.addf %8, %7 : vector<56x128xf32>
    %10 = vector.extract_strided_slice %1 {offsets = [0, 1], sizes = [56, 1], strides = [1, 1]} : vector<56x2xf32> to vector<56x1xf32>
    %11 = vector.extract_strided_slice %0 {offsets = [1, 0], sizes = [1, 128], strides = [1, 1]} : vector<2x128xf32> to vector<1x128xf32>
    %12 = vector.broadcast %10 : vector<56x1xf32> to vector<56x128xf32>
    %13 = vector.broadcast %11 : vector<1x128xf32> to vector<56x128xf32>
    %14 = arith.mulf %12, %13 : vector<56x128xf32>
    %15 = arith.addf %9, %14 : vector<56x128xf32>
    %cst = arith.constant 0.000000e+00 : f32
    %16 = vector.broadcast %cst : f32 to vector<56x128xf32>
    %17 = arith.maximumf %15, %16 : vector<56x128xf32>
    %c0_5 = arith.constant 0 : index
    %c0_6 = arith.constant 0 : index
    %18 = vector.load %arg4[%c0_5, %c0_6] : memref<2x56xf32, #tpu.memory_space<vmem>>, vector<2x56xf32>
    %cst_7 = arith.constant dense<0.000000e+00> : vector<2x128xf32>
    %19 = tpu.matmul %18, %17, %cst_7 {dimension_numbers = #tpu.dot_dimension_numbers<[1], [0], [0], [1], [0, 0, 1, 1], [], []>} : vector<2x56xf32>, vector<56x128xf32>, vector<2x128xf32> -> vector<2x128xf32>
    %c0_8 = arith.constant 0 : index
    %c0_9 = arith.constant 0 : index
    %20 = vector.load %arg5[%c0_8, %c0_9] : memref<2x1xf32, #tpu.memory_space<vmem>>, vector<2x1xf32>
    %21 = vector.broadcast %20 : vector<2x1xf32> to vector<2x128xf32>
    %22 = arith.addf %19, %21 : vector<2x128xf32>
    %c0_10 = arith.constant 0 : index
    %c0_11 = arith.constant 0 : index
    %23 = vector.load %arg6[%c0_10, %c0_11] : memref<2x128xf32, #tpu.memory_space<vmem>>, vector<2x128xf32>
    tpu.vector_store %arg6[%c0_10, %c0_11], %22 {strides = array<i32>} : memref<2x128xf32, #tpu.memory_space<vmem>>, vector<2x128xf32>,
    return
  }
  func.func @transform_0(%arg0: i32) -> (i32, i32) {
    %c0_i32 = arith.constant 0 : i32
    %c0_i32_0 = arith.constant 0 : i32
    return %c0_i32, %arg0 : i32, i32
  }
  func.func @transform_1(%arg0: i32) -> (i32, i32) {
    %c0_i32 = arith.constant 0 : i32
    %c0_i32_0 = arith.constant 0 : i32
    %c0_i32_1 = arith.constant 0 : i32
    return %c0_i32, %c0_i32_0 : i32, i32
  }
  func.func @transform_2(%arg0: i32) -> (i32, i32) {
    %c0_i32 = arith.constant 0 : i32
    %c0_i32_0 = arith.constant 0 : i32
    %c0_i32_1 = arith.constant 0 : i32
    return %c0_i32, %c0_i32_0 : i32, i32
  }
  func.func @transform_3(%arg0: i32) -> (i32, i32) {
    %c0_i32 = arith.constant 0 : i32
    %c0_i32_0 = arith.constant 0 : i32
    %c0_i32_1 = arith.constant 0 : i32
    return %c0_i32, %c0_i32_0 : i32, i32
  }
  func.func @transform_4(%arg0: i32) -> (i32, i32) {
    %c0_i32 = arith.constant 0 : i32
    %c0_i32_0 = arith.constant 0 : i32
    %c0_i32_1 = arith.constant 0 : i32
    return %c0_i32, %c0_i32_0 : i32, i32
  }
  func.func @transform_5(%arg0: i32) -> (i32, i32) {
    %c0_i32 = arith.constant 0 : i32
    %c0_i32_0 = arith.constant 0 : i32
    return %c0_i32, %arg0 : i32, i32
  }
}

</mosaic_0001>

<bundles_post_ra>
// kernel: odefunc_forward.1
= control target key start
LH: loop header
LB: loop body
LE: loop exit
PB: predicated region body
PF: predicated region fallthrough
CT: control target
= control target key end

     0   :  { %10 = vsyncpa [#allocation3], 0  ;;  %s885_s0 = inlined_call_operand.vmem [shape: f32[2,256], index: 0, kind: input, shape index: {}]   ;;  %s886_s1 = inlined_call_operand.vmem [shape: f32[56,2], index: 1, kind: input, shape index: {}]   ;;  %s887_s2 = inlined_call_operand.vmem [shape: f32[56,1], index: 2, kind: input, shape index: {}]   ;;  %s888_s3 = inlined_call_operand.vmem [shape: f32[2,56], index: 3, kind: input, shape index: {}]   ;;  %s889_s4 = inlined_call_operand.vmem [shape: f32[2,1], index: 4, kind: input, shape index: {}]   ;;  %s890_s5 = inlined_call_operand.hbm [shape: f32[2,256], index: 5, kind: output, shape index: {}]  }
   0x1   :  { %12 = vsyncpa [#allocation3 + $0x1], 0  ;;  %s732_s18 = smov 0   ;;  %s734_s19 = smov 0  }
   0x2   :  { %s736_s20 = smov 0   ;;  %s738_s21 = smov 0  }
   0x3 LB: > { %s753_s22 = sadd.s32 4294967295, %s694_s21   ;;  %s531_s23 = sadd.s32 4294967294, %s694_s21   ;;  %s694_s21 = sphi %s738_s21, %s896_s21   ;;  %s690_s20 = sphi %s736_s20, %s895_s20   ;;  %s686_s19 = sphi %s734_s19, %s894_s19   ;;  %s682_s18 = sphi %s732_s18, %s893_s18  }
   0x4   : > { %s757_s24 = sadd.s32 1, %s694_s21   ;;  %s135_s25 = sadd.s32 1, %s690_s20 }
   0x5   : > { %s132_s26 = ssub.s32 %s694_s21, %s757_s24  ;;  %p145_p0 = scmp.ne.s32.totalorder %s690_s20, %s686_s19 }
   0x6   : > { %p133_p1 = scmp.eq.s32.totalorder %s132_s26, 0  ;;  %p146_p2 = scmp.eq.s32.totalorder %s753_s22, 1 }
   0x7   : > { %p151_p3 = scmp.ne.s32.totalorder %s686_s19, %s682_s18  ;;  %p152_p4 = scmp.eq.s32.totalorder %s531_s23, 1 }
   0x8   : > { %s768_s27 = scalar_select %p133_p1, %s690_s20, %s135_s25  }
   0x9   : > { %p770_p5 = por %p146_p2, %p145_p0  ;;  %p774_p6 = por %p152_p4, %p151_p3 }
   0xa   : > { %p534_p7 = scmp.ge.s32.totalorder %s694_s21, 1  ;;  %p189_p8 = scmp.lt.s32.totalorder %s694_s21, 3 }
   0xc   : > { %p190_p9 = pnand %p534_p7, %p189_p8 }
   0xd   : > { %v228_v0 = vld [vmem:[%s887_s2] sm:$0xff] (!%p190_p9)  ;;  %v696_v2 = vmov (!%p190_p9), 0   ;;  %v229_v3 = vld [vmem:[%s887_s2 + $0x8] sm:$0xff] (!%p190_p9)  ;;  %v224_v5 = vld [vmem:[%s886_s1 + $0x18] sm:$0xff] (!%p190_p9)  ;;  %v697_v6 = vmov (!%p190_p9), 1   ;;  %v698_v12 = vmov (!%p190_p9), 0.0|0.0   ;;  %v270_v19 = vlaneseq (!%p190_p9) }
   0xe   : > { %193 = sbr.rel (%p190_p9) target bundleno = 433 (0x1b1), region = 40  ;;  %v221_v1 = vld [vmem:[%s886_s1] sm:$0xff] (!%p190_p9)  ;;  %621 = vset.pattern.permute.xlu1 (!%p190_p9), %v696_v2  ;;  %620 = vset.pattern.permute.xlu0 (!%p190_p9), %v696_v2  ;;  %v222_v4 = vld [vmem:[%s886_s1 + $0x8] sm:$0xff] (!%p190_p9)  ;;  %v223_v8 = vld [vmem:[%s886_s1 + $0x10] sm:$0xff] (!%p190_p9)  ;;  %vm699_vm0 = vmmov (!%p190_p9), 0   ;;  %v700_v17 = vmov (!%p190_p9), 0.0  }
   0xf   : > { %283 = vperm.xlu1 (!%p190_p9), %621, %v228_v0   ;;  %237 = vperm.xlu0 (!%p190_p9), %620, %v221_v1   ;;  %v226_v7 = vld [vmem:[%s886_s1 + $0x28] sm:$0xff] (!%p190_p9)  ;;  %v230_v9 = vld [vmem:[%s887_s2 + $0x10] sm:$0xff] (!%p190_p9)  ;;  %v231_v10 = vld [vmem:[%s887_s2 + $0x18] sm:$0xff] (!%p190_p9)  ;;  %p216_p10 = scmp.lt.s32.totalorder (!%p190_p9), %s753_s22, 1  ;;  %v271_v22 = vshrl.u32 (!%p190_p9), %v270_v19, 7  ;;  %vm383_vm1 = vcmask (!%p190_p9), 457728  }
  0x10   : > { %v225_v11 = vld [vmem:[%s886_s1 + $0x20] sm:$0xff] (!%p190_p9)  ;;  %567 = vmatprep.subr.bf16.mxu0 (!%p190_p9), %v698_v12  ;;  %v234_v13 = vld [vmem:[%s887_s2 + $0x30] sm:$0xff] (!%p190_p9)  ;;  %v233_v15 = vld [vmem:[%s887_s2 + $0x28] sm:$0xff] (!%p190_p9)  ;;  %564 = vmatprep.mubr.msk.f32.mxu0 (!%p190_p9), %vm699_vm0, %v700_v17  ;;  %s213_s10 = sand.u32 (!%p190_p9), 1, %s686_s19   ;;  %s539_s12 = sshll.u32 (!%p190_p9), %s753_s22, 5 }
  0x11   : > { %v232_v14 = vld [vmem:[%s887_s2 + $0x20] sm:$0xff] (!%p190_p9)  ;;  %v227_v16 = vld [vmem:[%s886_s1 + $0x30] sm:$0xff] (!%p190_p9)  ;;  %v272_v25 = vsub.s32 (!%p190_p9), 0, %v271_v22  ;;  %v353_v26 = vsub.s32 (!%p190_p9), 1, %v271_v22  ;;  %s535_s11 = sshll.u32 (!%p190_p9), %s213_s10, 1  ;;  %s843_s17 = scalar_lea.hbm (!%p190_p9), %s890_s5, %s539_s12 }
  0x12   : > { %v377_v18 = vld [vmem:[%s889_s4] sm:$0x3] (!%p190_p9)  ;;  %s215_s13 = scalar_lea.vmem (!%p190_p9), [#allocation2], %s535_s11  ;;  %s459_s23 = scalar_lea.sflag (!%p190_p9), [#allocation3], %s213_s10 }
  0x13   : > { %288 = vperm.xlu1 (!%p190_p9), %621, %v229_v3   ;;  %242 = vperm.xlu0 (!%p190_p9), %620, %v222_v4   ;;  %v376_v22 = vld [vmem:[%s888_s3] sm:$0x3] (!%p190_p9)  ;;  %s472_s14 = sshll.u32 (!%p190_p9), %s215_s13, 4  ;;  %s845_s14 = int_to_ptr.vmem [resolvable:$true] %s472_s14 }
  0x15   : > { %s217_s25 = scalar_select %p216_p10, %s753_s22, 1 }
  0x16   : > { %s701_s22 = smov [#allocation2]  }
  0x17   : > { %622 = vset.pattern.permute.xlu1 %v697_v6  ;;  %252 = vperm.xlu0 %620, %v224_v5   ;;  %s536_s26 = sshll.u32 %s217_s25, 1  ;;  %s632_s25 = scalar_lea.vmem %s845_s14, 32 }
  0x18   : > { %328 = vperm.xlu1 %622, %v222_v4   ;;  %s219_s7 = scalar_lea.vmem %s885_s0, %s536_s26  ;;  %p633_p11 = scmp.ne.s32.totalorder %s845_s14, %s632_s25 }
  0x19   : > { %v220_v27 = vld [vmem:[%s219_s7] sm:$0x3]  ;;  %s636_s26 = sshll.u32 %s701_s22, 4  ;;  %s637_s26 = int_to_ptr.vmem [resolvable:$false] %s636_s26 }
  0x1a   : > { %v273_v30 = vrot.slane %v220_v27, %v272_v25  ;;  %v354_v31 = vrot.slane %v220_v27, %v353_v26  ;;  %p634_p12 = pnand %p633_p11, %p770_p5  ;;  %s638_s30 = scalar_lea.vmem %s637_s26, 64 }
  0x1b   : > { %262 = vperm.xlu0 %620, %v226_v7   ;;  %p639_p0 = scmp.lt.s32.totalorder %s845_s14, %s637_s26  ;;  %p640_p1 = scmp.lt.s32.totalorder %s638_s30, %s632_s25 }
  0x1c   : > { %623 = vset.pattern.permute.xlu1 %v696_v2  ;;  %p635_p13 = pneg %p634_p12 }
  0x1d   : > { %247 = vperm.xlu1 %623, %v223_v8   ;;  %p641_p2 = por %p640_p1, %p639_p0 }
  0x1f   : > { %626 = vset.pattern.permute.xlu0 %v697_v6  ;;  %p642_p3 = pnand %p641_p2, %p635_p13 }
  0x20   : > { %324 = vperm.xlu0 %626, %v221_v1  }
  0x21   : > { %293 = vperm.xlu1 %623, %v230_v9  }
  0x24   : > { %332 = vperm.xlu0 %626, %v223_v8  }
  0x25   : > { %298 = vperm.xlu1 %623, %v231_v10  }
  0x28   : > { %340 = vperm.xlu0 %626, %v225_v11  }
  0x29   : > { %624 = vset.pattern.permute.xlu1 %v697_v6 }
  0x2a   : > { %336 = vperm.xlu1 %624, %v224_v5  }
  0x2c   : > { %629 = vset.pattern.permute.xlu0 %v696_v2 }
  0x2d   : > { %313 = vperm.xlu0 %629, %v234_v13  }
  0x2e   : > { %625 = vset.pattern.permute.xlu1 %v696_v2 }
  0x2f   : > { %257 = vperm.xlu1 %625, %v225_v11  }
  0x33   : > { %303 = vperm.xlu1 %625, %v232_v14  }
  0x37   : > { %308 = vperm.xlu1 %625, %v233_v15  }
  0x3b   : > { %627 = vset.pattern.permute.xlu1 %v697_v6 }
  0x3c   : > { %344 = vperm.xlu1 %627, %v226_v7  }
  0x40   : > { %628 = vset.pattern.permute.xlu1 %v696_v2 }
  0x41   : > { %267 = vperm.xlu1 %628, %v227_v16  }
  0x45   : > { %630 = vset.pattern.permute.xlu1 %v697_v6 }
  0x46   : > { %348 = vperm.xlu1 %630, %v227_v16  }
  0x4a   : > { %631 = vset.pattern.permute.xlu1 %v696_v2 }
  0x4b   : > { %380 = vperm.xlu1 %631, %v377_v18  }
  0x8e   : > { %v284_v20 = vpop.permute.xlu1 %283  ;;  %v238_v21 = vpop.permute.xlu0 %237 }
  0x8f   : > { %v274_v34 = vmul.f32 %v273_v30, %v238_v21 }
  0x91   : > { %v316_v39 = vadd.f32 %v284_v20, %v274_v34 }
  0x92   : > { %v289_v23 = vpop.permute.xlu1 %288  ;;  %v243_v24 = vpop.permute.xlu0 %242 }
  0x93   : > { %v275_v32 = vmul.f32 %v273_v30, %v243_v24 }
  0x95   : > { %v317_v37 = vadd.f32 %v289_v23, %v275_v32 }
  0x96   : > { %v253_v28 = vpop.permute.xlu0 %252 }
  0x97   : > { %v329_v29 = vpop.permute.xlu1 %328  ;;  %v277_v48 = vmul.f32 %v273_v30, %v253_v28 }
  0x98   : > { %v356_v35 = vmul.f32 %v354_v31, %v329_v29 }
  0x9a   : > { %v263_v33 = vpop.permute.xlu0 %262  ;;  %v363_v40 = vadd.f32 %v356_v35, %v317_v37 }
  0x9b   : > { %v279_v4 = vmul.f32 %v273_v30, %v263_v33 }
  0x9c   : > { %v248_v36 = vpop.permute.xlu1 %247  ;;  %v370_v45 = vmax.f32 %v363_v40, 0.0 }
  0x9d   : > { %v276_v49 = vmul.f32 %v273_v30, %v248_v36 }
  0x9f   : > { %v325_v38 = vpop.permute.xlu0 %324 }
  0xa0   : > { %v355_v41 = vmul.f32 %v354_v31, %v325_v38  ;;  %v294_v42 = vpop.permute.xlu1 %293 }
  0xa1   : > { %v318_v52 = vadd.f32 %v294_v42, %v276_v49 }
  0xa2   : > { %v362_v43 = vadd.f32 %v355_v41, %v316_v39 }
  0xa3   : > { %v333_v44 = vpop.permute.xlu0 %332 }
  0xa4   : > { %v369_v46 = vmax.f32 %v362_v43, 0.0  ;;  %v299_v47 = vpop.permute.xlu1 %298  ;;  %v357_v50 = vmul.f32 %v354_v31, %v333_v44 }
  0xa5   : > { %v319_v55 = vadd.f32 %v299_v47, %v277_v48 }
  0xa6   : > { %v568_v51 = vpack.c.bf16 %v370_v45, %v369_v46  ;;  %v364_v54 = vadd.f32 %v357_v50, %v318_v52 }
  0xa7   : > { %v341_v63 = vpop.permute.xlu0 %340 }
  0xa8   : > { %569 = vmatpush3.bf16.msra.mxu0 %v568_v51  ;;  %v371_v58 = vmax.f32 %v364_v54, 0.0  ;;  %v359_v3 = vmul.f32 %v354_v31, %v341_v63 }
  0xa9   : > { %v337_v53 = vpop.permute.xlu1 %336  ;;  %570 = vmatprep.subr.bf16.mxu0 %v698_v12 }
  0xaa   : > { %v358_v56 = vmul.f32 %v354_v31, %v337_v53 }
  0xac   : > { %v365_v57 = vadd.f32 %v358_v56, %v319_v55  ;;  %v314_v16 = vpop.permute.xlu0 %313 }
  0xae   : > { %v372_v59 = vmax.f32 %v365_v57, 0.0  ;;  %v258_v60 = vpop.permute.xlu1 %257 }
  0xaf   : > { %v278_v0 = vmul.f32 %v273_v30, %v258_v60 }
  0xb0   : > { %v571_v61 = vpack.c.bf16 %v372_v59, %v371_v58 }
  0xb2   : > { %v304_v62 = vpop.permute.xlu1 %303  ;;  %572 = vmatpush3.bf16.msra.mxu0 %v571_v61 }
  0xb3   : > { %573 = vmatprep.subr.bf16.mxu0 %v698_v12  ;;  %v320_v2 = vadd.f32 %v304_v62, %v278_v0 }
  0xb5   : > { %v366_v6 = vadd.f32 %v359_v3, %v320_v2 }
  0xb6   : > { %v309_v1 = vpop.permute.xlu1 %308 }
  0xb7   : > { %v321_v7 = vadd.f32 %v309_v1, %v279_v4  ;;  %v373_v10 = vmax.f32 %v366_v6, 0.0 }
  0xbb   : > { %v345_v5 = vpop.permute.xlu1 %344 }
  0xbc   : > { %v360_v8 = vmul.f32 %v354_v31, %v345_v5 }
  0xbe   : > { %v367_v9 = vadd.f32 %v360_v8, %v321_v7 }
  0xc0   : > { %v374_v11 = vmax.f32 %v367_v9, 0.0  ;;  %v268_v13 = vpop.permute.xlu1 %267 }
  0xc1   : > { %v280_v14 = vmul.f32 %v273_v30, %v268_v13 }
  0xc2   : > { %v574_v15 = vpack.c.bf16 %v374_v11, %v373_v10 }
  0xc3   : > { %v322_v18 = vadd.f32 %v314_v16, %v280_v14 }
  0xc4   : > { %575 = vmatpush3.bf16.msra.mxu0 %v574_v15 }
  0xc5   : > { %v349_v12 = vpop.permute.xlu1 %348  ;;  %562 = vmatprep.subr.mxu0 %v700_v17 }
  0xc6   : > { %v361_v19 = vmul.f32 %v354_v31, %v349_v12 }
  0xc8   : > { %v368_v20 = vadd.f32 %v361_v19, %v322_v18 }
  0xca   : > { %v375_v21 = vmax.f32 %v368_v20, 0.0  ;;  %v381_v23 = vpop.permute.xlu1 %380 }
  0xcc   : > { %563 = vmatpush3.msra.mxu0 %v375_v21 }
  0xcd   : > { %565 = vmatmul.mubr.msk.f32.vlgmr.msra.gmra.mrb[0].mxu0 %vm383_vm1, %v376_v22 }
 0x1a0   : > { %v453_v24 = vpop.f32.mrb[0].mxu0 }
 0x1a1   : > { %v454_v17 = vadd.f32 %v453_v24, %v381_v23  ;;  %v566_v25 = vpop.f32.mrb[1].mxu0 }
 0x1a3   : > { %457 = vst [vmem:[%s215_s13] sm:$0x3] %v454_v17 }
 0x1a4   : > { %645 = shalt.err (!%p642_p3)
}
 0x1a5   : > { %s646_s6 = scalar_lea.hbm %s843_s17, 32  ;;  %s650_s9 = scalar_lea.hbm %s890_s5, 64 }
 0x1a6   : > { %p647_p4 = scmp.ne.s32.totalorder %s843_s17, %s646_s6  ;;  %p651_p9 = scmp.lt.u32.totalorder %s843_s17, %s890_s5 }
 0x1a7   : > { %p652_p10 = scmp.lt.u32.totalorder %s650_s9, %s646_s6  ;;  %p654_p12 = scmp.lt.u32.totalorder %s646_s6, %s843_s17 }
 0x1a8   : > { %p648_p7 = pnand %p647_p4, %p770_p5 }
 0x1a9   : > { %p653_p11 = por %p652_p10, %p651_p9 }
 0x1aa   : > { %p649_p8 = pneg %p648_p7 }
 0x1ab   : > { %p655_p13 = por %p654_p12, %p653_p11 }
 0x1ad   : > { %p656_p0 = pnand %p655_p13, %p649_p8 }
 0x1af   : > { %659 = shalt.err (!%p656_p0)
}
 0x1b0   : > { %576 = dma.vmem_to_hbm [thread:$0]  (%p770_p5), %s845_s14, 32, %s843_s17, %s459_s23  }
 0x1b1 PF: > { %p582_p1 = scmp.ge.s32.totalorder %s694_s21, 2  ;;  %s484_s12 = sand.u32 1, %s682_s18  }
 0x1b2   : > { %s485_s13 = scalar_lea.sflag [#allocation3], %s484_s12 }
 0x1b3   : > { %p579_p2 = pnand %p582_p1, %p774_p6 }
 0x1b5   : > { %677 = dma.done.wait (!%p579_p2), %s485_s13, 32  }
 0x1b6   : > { %679 = vsyncadd (!%p579_p2), %s485_s13, 4294967264  ;;  %p15_p3 = scmp.ge.s32.totalorder %s757_s24, 4   ;;  %s893_s18 = smov %s686_s19 }
 0x1b7   : > { %s894_s19 = smov %s690_s20  ;;  %s895_s20 = smov %s768_s27 }
 0x1b8   : > { %s896_s21 = smov %s757_s24  ;;  %17 = sbr.rel (!%p15_p3) target bundleno = 3 (0x3), region = 75 }
 0x1bf   :  { %490 = vsyncpa [#allocation3], 1 }
 0x1c0   :  { %492 = vsyncpa [#allocation3 + $0x1], 1 }

</bundles_post_ra>
